<compile_context>
chip_gen: v5e
topology: v5e:2x2
jax: 0.10.0
libtpu: 0.0.40
codegen_flags: <defaults>
</compile_context>

<pallas_src>
import functools
import numpy as np
import jax
import jax.numpy as jnp
from jax import lax
from jax.experimental import pallas as pl
from jax.experimental.pallas import tpu as pltpu


def _round_up(x, m):
    return ((x + m - 1) // m) * m


def _round_down(x, m):
    return (x // m) * m


def _cdiv(a, b):
    return (a + b - 1) // b


# ----------------------------- Pallas kernels ------------------------------

def _ce_fused_kernel(logits_ref, labels_ref, hmat_ref, out_ref, *,
                     classes_per_head, batch, tile_b, tiles_per_core, need_mask):
    """Fused multi-head mean softmax cross-entropy (sums; 1/B in wrapper).

    logits_ref: [TB, C] float, labels_ref: [TB, NH] int32,
    hmat_ref:   [C, NH_pad] f32 head one-hot (constant block, DMA'd once),
    out_ref:    [1, 1, NH_pad] f32 per-core resident accumulator.
    """
    t = pl.program_id(1)

    @pl.when(t == 0)
    def _init():
        out_ref[...] = jnp.zeros_like(out_ref)

    x = logits_ref[...].astype(jnp.float32)                    # [TB, C]
    labels = labels_ref[...]                                   # [TB, NH]
    hmat = hmat_ref[...]                                       # [C, NH_pad]
    tb, c_total = x.shape
    nh = len(classes_per_head)

    starts = []
    s = 0
    for c in classes_per_head:
        starts.append(s)
        s += c

    # Per-column metadata on a single (1, C) row -- negligible VALU work,
    # replaces per-head mask / label re-derivation of the previous version.
    col = lax.broadcasted_iota(jnp.int32, (1, c_total), 1)
    head_id = jnp.zeros((1, c_total), jnp.int32)
    for st in starts[1:]:
        head_id = head_id + (col >= st).astype(jnp.int32)
    head_start = jnp.zeros((1, c_total), jnp.int32)
    for h, st in enumerate(starts):
        if st:
            head_start = jnp.where(head_id == h, st, head_start)
    local_col = (col - head_start).astype(jnp.float32)         # (1, C)

    # Per-head max for stability (NH XLU maxes), broadcast back per column,
    # then a SINGLE exp pass over the whole row (EUP work 1x instead of NHx).
    m_bcast = jnp.zeros_like(x)
    for h in range(nh):
        in_h = head_id == h                                    # (1, C)
        mh = jnp.max(jnp.where(in_h, x, -jnp.inf), axis=-1, keepdims=True)
        m_bcast = jnp.where(in_h, mh, m_bcast)
    xs = x - m_bcast
    ex = jnp.exp(xs)                                           # [TB, C], one EUP pass

    # Broadcast each row's per-head label to that head's columns with one MXU
    # matmul (exact: one-hot weights, integer-valued labels).
    ht = (lax.broadcasted_iota(jnp.int32, (nh, 1), 0)
          == head_id).astype(jnp.float32)                      # (NH, C)
    label_b = jnp.dot(labels.astype(jnp.float32), ht,
                      preferred_element_type=jnp.float32)      # [TB, C]
    picked_shift = jnp.where(local_col == label_b, xs, 0.0)    # [TB, C]

    # Segment sums on the otherwise-idle MXU: [TB, C] @ [C, NH_pad].
    denom = jnp.dot(ex, hmat, preferred_element_type=jnp.float32)
    picked = jnp.dot(picked_shift, hmat, preferred_element_type=jnp.float32)

    # lse_h - x_label = log(denom_h) - (x_label - m_h)
    per_ex = jnp.log(denom) - picked                           # [TB, NH_pad]

    if need_mask:
        row0 = (pl.program_id(0) * tiles_per_core + t) * tile_b
        row = row0 + lax.broadcasted_iota(jnp.int32, (tb, 1), 0)
        # Keep this a select: padded/duplicated rows may hold garbage (NaN/Inf).
        per_ex = jnp.where(row < batch, per_ex, 0.0)

    out_ref[...] += jnp.sum(per_ex, axis=0, keepdims=True).reshape(out_ref.shape)


def _bce_fused_kernel(logits_ref, labels_ref, out_ref, *,
                      batch, tile_b, tiles_per_core, need_mask):
    """Fused multi-head mean BCE-with-logits (one logit column per head).

    logits_ref: [TB, NH] float, labels_ref: [TB, NH] float,
    out_ref:    [1, 1, NH] f32 per-core resident accumulator.
    Stable: max(z,0) - z*t + log(1 + exp(-|z|)).
    """
    t = pl.program_id(1)

    @pl.when(t == 0)
    def _init():
        out_ref[...] = jnp.zeros_like(out_ref)

    z = logits_ref[...].astype(jnp.float32)
    tgt = labels_ref[...].astype(jnp.float32)
    per = jnp.maximum(z, 0.0) - z * tgt + jnp.log(1.0 + jnp.exp(-jnp.abs(z)))
    if need_mask:
        row0 = (pl.program_id(0) * tiles_per_core + t) * tile_b
        row = row0 + lax.broadcasted_iota(jnp.int32, per.shape, 0)
        per = jnp.where(row < batch, per, 0.0)
    out_ref[...] += jnp.sum(per, axis=0, keepdims=True).reshape(out_ref.shape)


# ------------------------------ Module glue --------------------------------

def compute_src_loss(logits, y, gl, binary: bool, classes_per_head,
                     use_group_labels: bool, tile_rows=None):
    """Pallas equivalent of diverse_gen.losses.src.compute_src_loss (fused)."""
    B, C_total = logits.shape
    nh = len(classes_per_head)
    assert sum(classes_per_head) == C_total

    # One labels array for all heads: [B, NH] (single cheap XLA op).
    if use_group_labels:
        labels_all = gl[:, :nh]
    else:
        y2 = y.reshape(B, -1)[:, :1]
        labels_all = jnp.broadcast_to(y2, (B, nh))
    labels_all = labels_all.astype(jnp.float32 if binary else jnp.int32)

    if binary:
        # F.binary_cross_entropy_with_logits after squeeze(-1) implies c == 1.
        assert all(c == 1 for c in classes_per_head), \
            "binary path expects one logit column per head"

    # ---- VMEM budgeting: byte-, dtype- and lane-padding-aware ----
    itemsize = jnp.dtype(logits.dtype).itemsize
    c_lane = _round_up(max(C_total, 1), 128)          # VMEM lane padding of logits
    nh_lane = _round_up(max(nh, 1), 128)              # VMEM lane padding of labels
    try:
        vmem_cap = int(pltpu.get_tpu_info().vmem_capacity_bytes)
    except Exception:
        vmem_cap = 64 * 1024 * 1024                   # conservative (v7x per-TC)
    vmem_limit = int(min(vmem_cap * 3 // 4, 100 * 1024 * 1024))
    # Per-row VMEM: 2x double-buffered logits block + 2x labels block
    # + ~6 full-width f32 in-kernel temporaries (x, m, xs, ex, picked, label_b).
    per_row_bytes = 2 * c_lane * itemsize + 2 * nh_lane * 4 + 6 * c_lane * 4
    tile_cap = max(8, _round_down(int(vmem_limit * 0.8) // per_row_bytes, 8))
    if tile_rows is not None:
        tile_cap = max(8, _round_down(int(tile_rows), 8))
    tile_b = B if B <= tile_cap else tile_cap

    nt = _cdiv(B, tile_b)
    num_cores = 2 if nt >= 2 else 1                   # v7x: 2 TCs; elsewhere harmless
    tpc = _cdiv(nt, num_cores)
    need_mask = (num_cores * tpc * tile_b) != B

    def in_map(c, t):
        # Clamp so an odd tile split never issues an OOB DMA; the duplicated
        # tile's rows are masked out inside the kernel (global row >= B).
        return (jnp.minimum(c * tpc + t, nt - 1), 0)

    if binary:
        kernel = functools.partial(
            _bce_fused_kernel, batch=B, tile_b=tile_b,
            tiles_per_core=tpc, need_mask=need_mask)
        out = pl.pallas_call(
            kernel,
            out_shape=jax.ShapeDtypeStruct((num_cores, 1, nh), jnp.float32),
            grid_spec=pltpu.PrefetchScalarGridSpec(
                num_scalar_prefetch=0,
                grid=(num_cores, tpc),
                in_specs=[pl.BlockSpec((tile_b, C_total), in_map),
                          pl.BlockSpec((tile_b, nh), in_map)],
                out_specs=pl.BlockSpec((1, 1, nh), lambda c, t: (c, 0, 0)),
            ),
            compiler_params=pltpu.CompilerParams(
                dimension_semantics=("parallel", "arbitrary"),
                vmem_limit_bytes=vmem_limit),
        )(logits, labels_all)
        sums = jnp.sum(out[:, 0, :nh], axis=0)
    else:
        nh_pad = _round_up(nh, 128)
        heads_np = np.repeat(np.arange(nh), np.asarray(classes_per_head))
        hmat_np = np.zeros((C_total, nh_pad), np.float32)
        hmat_np[np.arange(C_total), heads_np] = 1.0
        if nh_pad > nh:
            hmat_np[0, nh:] = 1.0   # keep padded-head denominators finite (>0)
        hmat = jnp.asarray(hmat_np)

        kernel = functools.partial(
            _ce_fused_kernel, classes_per_head=tuple(classes_per_head),
            batch=B, tile_b=tile_b, tiles_per_core=tpc, need_mask=need_mask)
        out = pl.pallas_call(
            kernel,
            out_shape=jax.ShapeDtypeStruct((num_cores, 1, nh_pad), jnp.float32),
            grid_spec=pltpu.PrefetchScalarGridSpec(
                num_scalar_prefetch=0,
                grid=(num_cores, tpc),
                in_specs=[pl.BlockSpec((tile_b, C_total), in_map),
                          pl.BlockSpec((tile_b, nh), in_map),
                          pl.BlockSpec((C_total, nh_pad), lambda c, t: (0, 0))],
                out_specs=pl.BlockSpec((1, 1, nh_pad), lambda c, t: (c, 0, 0)),
            ),
            compiler_params=pltpu.CompilerParams(
                dimension_semantics=("parallel", "arbitrary"),
                vmem_limit_bytes=vmem_limit),
        )(logits, labels_all, hmat)
        sums = jnp.sum(out[:, 0, :nh], axis=0)

    losses_vec = sums / B          # 1/B moved out of the kernel (no finalize branch)
    return [losses_vec[h] for h in range(nh)]


class SrcLoss:
    def __init__(self, binary: bool, classes_per_head, use_group_labels: bool):
        self.binary = binary
        self.classes_per_head = classes_per_head
        self.use_group_labels = use_group_labels

    def __call__(self, logits, y, gl):
        return compute_src_loss(logits, y, gl, self.binary,
                                self.classes_per_head, self.use_group_labels)


# ----------------------------- Reference (JAX) -----------------------------

def _ref_src_loss(logits, y, gl, binary, classes_per_head, use_group_labels):
    losses = []
    start = 0
    for i, c in enumerate(classes_per_head):
        lg = logits[:, start:start + c].astype(jnp.float32)
        start += c
        lab = gl[:, i:i + 1] if use_group_labels else y.reshape(y.shape[0], -1)[:, :1]
        if binary:
            z = lg[:, 0]
            t = lab[:, 0].astype(jnp.float32)
            l = jnp.mean(jnp.maximum(z, 0) - z * t + jnp.log1p(jnp.exp(-jnp.abs(z))))
        else:
            lab_i = lab[:, 0].astype(jnp.int32)
            lse = jax.scipy.special.logsumexp(lg, axis=-1)
            picked = jnp.take_along_axis(lg, lab_i[:, None], axis=-1)[:, 0]
            l = jnp.mean(lse - picked)
        losses.append(l)
    return losses


# ---------------------------------- Main -----------------------------------

if __name__ == "__main__":
    key = jax.random.PRNGKey(0)
    B = 8
    classes_per_head = [4, 6]
    C_total = sum(classes_per_head)

    k1, k2, k3 = jax.random.split(key, 3)
    logits = jax.random.normal(k1, (B, C_total), dtype=jnp.float32)
    y = jax.random.randint(k2, (B, 1), 0, min(classes_per_head), dtype=jnp.int32)
    gl = jnp.stack(
        [jax.random.randint(jax.random.fold_in(k3, i), (B,), 0, c, dtype=jnp.int32)
         for i, c in enumerate(classes_per_head)], axis=-1)          # [B, num_heads]

    # 1) Multi-class (binary=False) path with group labels.
    mod = SrcLoss(binary=False, classes_per_head=classes_per_head, use_group_labels=True)
    losses = [jax.block_until_ready(l) for l in mod(logits, y, gl)]
    ref = _ref_src_loss(logits, y, gl, False, classes_per_head, True)
    for got, want in zip(losses, ref):
        np.testing.assert_allclose(np.asarray(got), np.asarray(want), rtol=1e-5, atol=1e-5)

    # 2) Binary path (classes_per_head = [1, 1]), shared labels.
    bin_cph = [1, 1]
    bin_logits = jax.random.normal(jax.random.fold_in(key, 7), (B, 2), dtype=jnp.float32)
    bin_y = jax.random.randint(jax.random.fold_in(key, 9), (B, 1), 0, 2, dtype=jnp.int32)
    bin_mod = SrcLoss(binary=True, classes_per_head=bin_cph, use_group_labels=False)
    bin_losses = [jax.block_until_ready(l) for l in bin_mod(bin_logits, bin_y, gl)]
    bin_ref = _ref_src_loss(bin_logits, bin_y, gl, True, bin_cph, False)
    for got, want in zip(bin_losses, bin_ref):
        np.testing.assert_allclose(np.asarray(got), np.asarray(want), rtol=1e-5, atol=1e-5)

    # 3) Forced multi-tile / multi-core accumulation path (small tile override):
    #    exercises the per-core accumulator rows, partial-tile masking and the
    #    clamped duplicated tile on an odd split.
    B3 = 20
    logits3 = jax.random.normal(jax.random.fold_in(key, 11), (B3, C_total), jnp.float32)
    gl3 = jnp.stack(
        [jax.random.randint(jax.random.fold_in(key, 20 + i), (B3,), 0, c, dtype=jnp.int32)
         for i, c in enumerate(classes_per_head)], axis=-1)
    y3 = jnp.zeros((B3, 1), jnp.int32)
    got3 = compute_src_loss(logits3, y3, gl3, False, classes_per_head, True, tile_rows=8)
    ref3 = _ref_src_loss(logits3, y3, gl3, False, classes_per_head, True)
    for g, w in zip(got3, ref3):
        np.testing.assert_allclose(np.asarray(jax.block_until_ready(g)),
                                   np.asarray(w), rtol=1e-5, atol=1e-5)

    print("KERNEL_OK")
</pallas_src>

<mosaic_0001>
module attributes {stable_mosaic.version = 11 : i64} {
  func.func @_ce_fused_kernel(%arg0: i32, %arg1: i32, %arg2: memref<8x10xf32, #tpu.memory_space<vmem>>, %arg3: memref<8x2xi32, #tpu.memory_space<vmem>>, %arg4: memref<10x128xf32, #tpu.memory_space<vmem>>, %arg5: memref<1x1x128xf32, #tpu.memory_space<vmem>>) attributes {dimension_semantics = [#tpu.dimension_semantics<parallel>, #tpu.dimension_semantics<arbitrary>], iteration_bounds = array<i64: 1, 1>, scalar_prefetch = 0 : i64, scratch_operands = 0 : i64, tpu.core_type = #tpu.core_type<tc>, window_params = [{transform_indices = @transform_0, window_bounds = array<i64: 8, 10>}, {transform_indices = @transform_1, window_bounds = array<i64: 8, 2>}, {pipeline_mode = #tpu.pipeline_mode<synchronous>, transform_indices = @transform_2, window_bounds = array<i64: 10, 128>}, {transform_indices = @transform_3, window_bounds = array<i64: 1, 1, 128>}]} {
    %c0_i32 = arith.constant 0 : i32
    %0 = arith.cmpi eq, %arg1, %c0_i32 : i32
    %1 = arith.extui %0 : i1 to i32
    %c0_i32_0 = arith.constant 0 : i32
    %2 = arith.cmpi ne, %1, %c0_i32_0 : i32
    scf.if %2 {
      %cst_26 = arith.constant 0.000000e+00 : f32
      %70 = vector.broadcast %cst_26 : f32 to vector<1x1x128xf32>
      %c0_27 = arith.constant 0 : index
      %c0_28 = arith.constant 0 : index
      %c0_29 = arith.constant 0 : index
      %71 = vector.load %arg5[%c0_27, %c0_28, %c0_29] : memref<1x1x128xf32, #tpu.memory_space<vmem>>, vector<1x1x128xf32>
      tpu.vector_store %arg5[%c0_27, %c0_28, %c0_29], %70 {strides = array<i32>} : memref<1x1x128xf32, #tpu.memory_space<vmem>>, vector<1x1x128xf32>,
    } else {
    }
    %c0 = arith.constant 0 : index
    %c0_1 = arith.constant 0 : index
    %3 = vector.load %arg2[%c0, %c0_1] : memref<8x10xf32, #tpu.memory_space<vmem>>, vector<8x10xf32>
    %c0_2 = arith.constant 0 : index
    %c0_3 = arith.constant 0 : index
    %4 = vector.load %arg3[%c0_2, %c0_3] : memref<8x2xi32, #tpu.memory_space<vmem>>, vector<8x2xi32>
    %c0_4 = arith.constant 0 : index
    %c0_5 = arith.constant 0 : index
    %5 = vector.load %arg4[%c0_4, %c0_5] : memref<10x128xf32, #tpu.memory_space<vmem>>, vector<10x128xf32>
    %6 = tpu.iota {dimensions = array<i32: 1>} : vector<1x10xi32>
    %c0_i32_6 = arith.constant 0 : i32
    %7 = vector.broadcast %c0_i32_6 : i32 to vector<1x10xi32>
    %c4_i32 = arith.constant 4 : i32
    %8 = vector.broadcast %c4_i32 : i32 to vector<1x10xi32>
    %9 = arith.cmpi sge, %6, %8 : vector<1x10xi32>
    %10 = arith.extui %9 : vector<1x10xi1> to vector<1x10xi32>
    %11 = arith.addi %7, %10 : vector<1x10xi32>
    %c0_i32_7 = arith.constant 0 : i32
    %12 = vector.broadcast %c0_i32_7 : i32 to vector<1x10xi32>
    %c1_i32 = arith.constant 1 : i32
    %13 = vector.broadcast %c1_i32 : i32 to vector<1x10xi32>
    %14 = arith.cmpi eq, %11, %13 : vector<1x10xi32>
    %c4_i32_8 = arith.constant 4 : i32
    %15 = vector.broadcast %c4_i32_8 : i32 to vector<1x10xi32>
    %16 = arith.select %14, %15, %12 : vector<1x10xi1>, vector<1x10xi32>
    %17 = arith.subi %6, %16 : vector<1x10xi32>
    %18 = arith.sitofp %17 : vector<1x10xi32> to vector<1x10xf32>
    %cst = arith.constant 0.000000e+00 : f32
    %19 = vector.broadcast %cst : f32 to vector<8x10xf32>
    %c0_i32_9 = arith.constant 0 : i32
    %20 = vector.broadcast %c0_i32_9 : i32 to vector<1x10xi32>
    %21 = arith.cmpi eq, %11, %20 : vector<1x10xi32>
    %cst_10 = arith.constant 0xFF800000 : f32
    %22 = vector.shape_cast %21 : vector<1x10xi1> to vector<1x10xi1>
    %23 = vector.broadcast %22 : vector<1x10xi1> to vector<8x10xi1>
    %24 = vector.broadcast %cst_10 : f32 to vector<8x10xf32>
    %25 = arith.select %23, %3, %24 : vector<8x10xi1>, vector<8x10xf32>
    %cst_11 = arith.constant dense<0xFF800000> : vector<8xf32>
    %26 = vector.multi_reduction <maximumf>, %25, %cst_11 [1] : vector<8x10xf32> to vector<8xf32>
    %27 = vector.shape_cast %26 : vector<8xf32> to vector<8x1xf32>
    %28 = vector.shape_cast %21 : vector<1x10xi1> to vector<1x10xi1>
    %29 = vector.broadcast %28 : vector<1x10xi1> to vector<8x10xi1>
    %30 = vector.shape_cast %27 : vector<8x1xf32> to vector<8x1xf32>
    %31 = vector.broadcast %30 : vector<8x1xf32> to vector<8x10xf32>
    %32 = arith.select %29, %31, %19 : vector<8x10xi1>, vector<8x10xf32>
    %c1_i32_12 = arith.constant 1 : i32
    %33 = vector.broadcast %c1_i32_12 : i32 to vector<1x10xi32>
    %34 = arith.cmpi eq, %11, %33 : vector<1x10xi32>
    %cst_13 = arith.constant 0xFF800000 : f32
    %35 = vector.shape_cast %34 : vector<1x10xi1> to vector<1x10xi1>
    %36 = vector.broadcast %35 : vector<1x10xi1> to vector<8x10xi1>
    %37 = vector.broadcast %cst_13 : f32 to vector<8x10xf32>
    %38 = arith.select %36, %3, %37 : vector<8x10xi1>, vector<8x10xf32>
    %cst_14 = arith.constant dense<0xFF800000> : vector<8xf32>
    %39 = vector.multi_reduction <maximumf>, %38, %cst_14 [1] : vector<8x10xf32> to vector<8xf32>
    %40 = vector.shape_cast %39 : vector<8xf32> to vector<8x1xf32>
    %41 = vector.shape_cast %34 : vector<1x10xi1> to vector<1x10xi1>
    %42 = vector.broadcast %41 : vector<1x10xi1> to vector<8x10xi1>
    %43 = vector.shape_cast %40 : vector<8x1xf32> to vector<8x1xf32>
    %44 = vector.broadcast %43 : vector<8x1xf32> to vector<8x10xf32>
    %45 = arith.select %42, %44, %32 : vector<8x10xi1>, vector<8x10xf32>
    %46 = arith.subf %3, %45 : vector<8x10xf32>
    %47 = math.exp %46 : vector<8x10xf32>
    %48 = tpu.iota {dimensions = array<i32: 0>} : vector<2x1xi32>
    %49 = vector.broadcast %48 : vector<2x1xi32> to vector<2x10xi32>
    %50 = vector.broadcast %11 : vector<1x10xi32> to vector<2x10xi32>
    %51 = arith.cmpi eq, %49, %50 : vector<2x10xi32>
    %52 = arith.extui %51 : vector<2x10xi1> to vector<2x10xi32>
    %53 = arith.sitofp %52 : vector<2x10xi32> to vector<2x10xf32>
    %54 = arith.sitofp %4 : vector<8x2xi32> to vector<8x2xf32>
    %cst_15 = arith.constant dense<0.000000e+00> : vector<8x10xf32>
    %55 = tpu.matmul %54, %53, %cst_15 {dimension_numbers = #tpu.dot_dimension_numbers<[1], [0], [0], [1], [0, 0, 1, 1], [], []>} : vector<8x2xf32>, vector<2x10xf32>, vector<8x10xf32> -> vector<8x10xf32>
    %56 = vector.broadcast %18 : vector<1x10xf32> to vector<8x10xf32>
    %57 = arith.cmpf oeq, %56, %55 : vector<8x10xf32>
    %cst_16 = arith.constant 0.000000e+00 : f32
    %58 = vector.broadcast %cst_16 : f32 to vector<8x10xf32>
    %59 = arith.select %57, %46, %58 : vector<8x10xi1>, vector<8x10xf32>
    %cst_17 = arith.constant dense<0.000000e+00> : vector<8x128xf32>
    %60 = tpu.matmul %47, %5, %cst_17 {dimension_numbers = #tpu.dot_dimension_numbers<[1], [0], [0], [1], [0, 0, 1, 1], [], []>} : vector<8x10xf32>, vector<10x128xf32>, vector<8x128xf32> -> vector<8x128xf32>
    %cst_18 = arith.constant dense<0.000000e+00> : vector<8x128xf32>
    %61 = tpu.matmul %59, %5, %cst_18 {dimension_numbers = #tpu.dot_dimension_numbers<[1], [0], [0], [1], [0, 0, 1, 1], [], []>} : vector<8x10xf32>, vector<10x128xf32>, vector<8x128xf32> -> vector<8x128xf32>
    %62 = math.log %60 : vector<8x128xf32>
    %63 = arith.subf %62, %61 : vector<8x128xf32>
    %c0_19 = arith.constant 0 : index
    %c0_20 = arith.constant 0 : index
    %c0_21 = arith.constant 0 : index
    %64 = vector.load %arg5[%c0_19, %c0_20, %c0_21] : memref<1x1x128xf32, #tpu.memory_space<vmem>>, vector<1x1x128xf32>
    %cst_22 = arith.constant dense<0.000000e+00> : vector<128xf32>
    %65 = vector.multi_reduction <add>, %63, %cst_22 [0] : vector<8x128xf32> to vector<128xf32>
    %66 = vector.shape_cast %65 : vector<128xf32> to vector<1x128xf32>
    %67 = vector.shape_cast %66 : vector<1x128xf32> to vector<1x1x128xf32>
    %68 = arith.addf %64, %67 : vector<1x1x128xf32>
    %c0_23 = arith.constant 0 : index
    %c0_24 = arith.constant 0 : index
    %c0_25 = arith.constant 0 : index
    %69 = vector.load %arg5[%c0_23, %c0_24, %c0_25] : memref<1x1x128xf32, #tpu.memory_space<vmem>>, vector<1x1x128xf32>
    tpu.vector_store %arg5[%c0_23, %c0_24, %c0_25], %68 {strides = array<i32>} : memref<1x1x128xf32, #tpu.memory_space<vmem>>, vector<1x1x128xf32>,
    return
  }
  func.func @transform_0(%arg0: i32, %arg1: i32) -> (i32, i32) {
    %c1_i32 = arith.constant 1 : i32
    %0 = arith.muli %arg0, %c1_i32 : i32
    %1 = arith.addi %0, %arg1 : i32
    %c0_i32 = arith.constant 0 : i32
    %2 = arith.minsi %1, %c0_i32 : i32
    %c0_i32_0 = arith.constant 0 : i32
    %c0_i32_1 = arith.constant 0 : i32
    return %2, %c0_i32_0 : i32, i32
  }
  func.func @transform_1(%arg0: i32, %arg1: i32) -> (i32, i32) {
    %c1_i32 = arith.constant 1 : i32
    %0 = arith.muli %arg0, %c1_i32 : i32
    %1 = arith.addi %0, %arg1 : i32
    %c0_i32 = arith.constant 0 : i32
    %2 = arith.minsi %1, %c0_i32 : i32
    %c0_i32_0 = arith.constant 0 : i32
    %c0_i32_1 = arith.constant 0 : i32
    return %2, %c0_i32_0 : i32, i32
  }
  func.func @transform_2(%arg0: i32, %arg1: i32) -> (i32, i32) {
    %c0_i32 = arith.constant 0 : i32
    %c0_i32_0 = arith.constant 0 : i32
    %c0_i32_1 = arith.constant 0 : i32
    return %c0_i32, %c0_i32_0 : i32, i32
  }
  func.func @transform_3(%arg0: i32, %arg1: i32) -> (i32, i32, i32) {
    %c0_i32 = arith.constant 0 : i32
    %c0_i32_0 = arith.constant 0 : i32
    %c0_i32_1 = arith.constant 0 : i32
    return %arg0, %c0_i32, %c0_i32_0 : i32, i32, i32
  }
}

</mosaic_0001>

<bundles_post_ra>
// kernel: tpu_custom_call.1
= control target key start
LH: loop header
LB: loop body
LE: loop exit
PB: predicated region body
PF: predicated region fallthrough
CT: control target
= control target key end

     0   :  { %8 = vsyncpa [#allocation3], 0  ;;  %s377_s0 = inlined_call_operand.vmem [shape: f32[8,10], index: 0, kind: input, shape index: {}]   ;;  %s378_s1 = inlined_call_operand.vmem [shape: s32[8,2], index: 1, kind: input, shape index: {}]   ;;  %s379_s2 = inlined_call_operand.hbm [shape: f32[10,128], index: 2, kind: input, shape index: {}]   ;;  %s380_s3 = inlined_call_operand.hbm [shape: f32[1,1,128], index: 3, kind: output, shape index: {}]  }
   0x1   :  { %9 = vsyncpa [#allocation4], 0  ;;  %s38_s14 = sshll.u32 %s379_s2, 4  ;;  %s319_s15 = smov [#allocation2]   ;;  %s39_s14 = int_to_ptr.hbm [resolvable:$true] %s38_s14 }
   0x2   :  { %s40_s16 = sshll.u32 %s319_s15, 4  ;;  %s320_s17 = smov 128   ;;  %s41_s16 = int_to_ptr.vmem [resolvable:$true] %s40_s16 }
   0x3   :  { %s321_s18 = smov 8  }
   0x4   :  { %46 = dma.hbm_to_vmem [thread:$0]  %s39_s14, 256, %s41_s16, [#allocation3], %s320_s17, %s320_s17, %s321_s18  }
   0x5   :  { %315 = dma.done.wait [#allocation3], 256  }
   0x6   :  { %316 = vsyncadd [#allocation3], 4294967040  ;;  %v94_v0 = vlaneseq  ;;  %v322_v1 = vmov 0.0   ;;  %v323_v4 = vmov 0   ;;  %vm131_vm1 = vcmask 1041408   ;;  %v91_v8 = vld [vmem:[%s378_s1] sm:$0xff] }
   0x7   :  { %89 = vst [vmem:[#allocation5] sm:$0x1] %v322_v1  ;;  %vm106_vm4 = vcmask 80896   ;;  %vm127_vm5 = vcmask 15360   ;;  %v90_v9 = vld [vmem:[%s377_s0] sm:$0xff]  ;;  %v126_v10 = vcvt.s32.f32 %v91_v8  ;;  %s324_s0 = smov [#allocation5]  }
   0x8   :  { %v95_v2 = vand.u32 127, %v94_v0  ;;  %v122_v3 = vshrl.u32 %v94_v0, 7  ;;  %v93_v15 = vld [vmem:[#allocation2 + $0x8] sm:$0x3]  ;;  %v92_v16 = vld [vmem:[#allocation2] sm:$0xff]  ;;  %s223_s1 = sshll.u32 %s324_s0, 4  ;;  %s224_s1 = int_to_ptr.vmem [resolvable:$true] %s223_s1 }
   0x9   :  { %255 = vmatpush.msk.msra.mxu2 %vm131_vm1, %v93_v15  ;;  %253 = vmatpush.msk.msra.mxu1 %vm131_vm1, %v93_v15  ;;  %s225_s24 = sshll.u32 %s380_s3, 4  ;;  %s226_s24 = int_to_ptr.hbm [resolvable:$true] %s225_s24 }
   0xa   :  { %vm96_vm0 = vcmp.ge.s32.totalorder %v95_v2, 4 }
   0xb   :  { %v97_v5 = vsel %vm96_vm0, 1, %v323_v4  ;;  %vm350_vm2 = vmneg %vm96_vm0  ;;  %v113_v13 = vsel %vm96_vm0, %v90_v9, -inf  ;;  %201 = vmatpush.msra.mxu2 %v92_v16  ;;  %178 = vmatpush.msra.mxu1 %v92_v16  ;;  %v99_v18 = vsel %vm96_vm0, 4, %v323_v4 }
   0xc   :  { %vm123_vm3 = vcmp.eq.s32.totalorder %v122_v3, %v97_v5  ;;  %v105_v11 = vsel %vm350_vm2, %v90_v9, -inf  ;;  %v114_v14 = vsel %vm106_vm4, %v113_v13, -inf  ;;  %v100_v19 = vsub.s32 %v95_v2, %v99_v18 }
   0xd   :  { %v250_v7 = vsel %vm123_vm3, 1.0, %v322_v1  ;;  %v107_v12 = vsel %vm106_vm4, %v105_v11, -inf }
   0xe   :  { %251 = vmatpush.msk.msra.mxu0 %vm131_vm1, %v250_v7  ;;  %108 = vmax.xlane.f32.xlu0 %v107_v12  ;;  %v101_v20 = vcvt.s32.f32 %v100_v19  ;;  %v209_v39 = vld [vmem:[#allocation5] sm:$0x1] }
   0xf   :  { %252 = vmatmul.msk.f32.vlgmr.msra.gmra.mxu0 %vm127_vm5, %v126_v10 }
  0x16   :  { %115 = vmax.xlane.f32.xlu0 %v114_v14 }
  0x81   :  { %v109_v17 = vpop.xlane.xlu0 %108 }
  0x82   :  { %v110_v21 = vsel %vm350_vm2, %v109_v17, 0.0 }
  0x89   :  { %v116_v22 = vpop.xlane.xlu0 %115 }
  0x8a   :  { %v117_v23 = vsel %vm96_vm0, %v116_v22, %v110_v21 }
  0x8b   :  { %v118_v24 = vsub.f32 %v90_v9, %v117_v23 }
  0x8c   :  { %v152_v25 = vpop.f32.mrf.mxu0 }
  0x8d   :  { %vm155_vm6 = vcmp.eq.f32.partialorder %v101_v20, %v152_v25  ;;  %v119_v26 = vmul.f32 1.442695, %v118_v24 }
  0x8e   :  { %v156_v27 = vsel %vm155_vm6, %v118_v24, 0.0 }
  0x8f   :  { %256 = vmatmul.msk.f32.vlgmr.msra.gmra.mxu2 %vm106_vm4, %v156_v27  ;;  %263 = vpow2.f32 %v119_v26 }
  0x95   :  { %v264_v28 = vpop.eup %263 }
  0x96   :  { %254 = vmatmul.msk.f32.vlgmr.msra.gmra.mxu1 %vm106_vm4, %v264_v28 }
 0x112   :  { %v203_v32 = vpop.f32.mrf.mxu2 }
 0x113   :  { %v180_v29 = vpop.f32.mrf.mxu1 }
 0x114   :  { %265 = vlog2.f32 %v180_v29 }
 0x11a   :  { %v266_v30 = vpop.eup %265 }
 0x11b   :  { %v207_v31 = vmul.f32 0.6931472, %v266_v30 }
 0x11d   :  { %v208_v33 = vsub.f32 %v207_v31, %v203_v32 }
 0x11f   :  { %v210_v34 = vrot.slane %v208_v33, 4 }
 0x121   :  { %v211_v35 = vadd.f32 %v210_v34, %v208_v33 }
 0x123   :  { %v212_v36 = vrot.slane %v211_v35, 2 }
 0x125   :  { %v213_v37 = vadd.f32 %v212_v36, %v211_v35 }
 0x127   :  { %v214_v38 = vrot.slane %v213_v37, 1 }
 0x129   :  { %v215_v40 = vadd.f32 %v214_v38, %v213_v37 }
 0x12b   :  { %v216_v41 = vadd.f32 %v215_v40, %v209_v39 }
 0x12d   :  { %217 = vst [vmem:[#allocation5] sm:$0x1] %v216_v41 }
 0x12e   :  { %228 = dma.vmem_to_hbm [thread:$0]  %s224_s1, 16, %s226_s24, [#allocation4]  }
 0x12f   :  { %317 = dma.done.wait [#allocation4], 16  }
 0x130   :  { %318 = vsyncadd [#allocation4], 4294967280 }
 0x131   :  { %233 = vsyncpa [#allocation3], 1 }
 0x132   :  { %234 = vsyncpa [#allocation4], 1 }

</bundles_post_ra>
